<compile_context>
chip_gen: v7x
topology: tpu7x:2x2x1
jax: 0.10.0
libtpu: 0.0.40
codegen_flags: <defaults>
</compile_context>

<pallas_src>
import functools

import jax
import jax.numpy as jnp
from jax.experimental import pallas as pl
from jax.experimental.pallas import tpu as pltpu


def _round_up(n, m):
    return ((n + m - 1) // m) * m


def nlinear_kernel(x_ref, wt_ref, b_ref, fcw_ref, o_ref):
    """Grid = (batch blocks ["parallel"], channels ["arbitrary" reduction]).

    x_ref  : (bb, W)      one channel's series for this batch block (bf16 or f32)
    wt_ref : (W, F_pad)   shared Linear(W->F) weight, pre-transposed + lane-padded
    b_ref  : (1, F_pad)   Linear bias (f32, lane-padded)
    fcw_ref: (C,)  SMEM   final_layer.weight scalars
    o_ref  : (bb, F_pad)  f32 output accumulator, resident across the channel axis
    """
    c = pl.program_id(1)
    w_len = x_ref.shape[1]

    x = x_ref[...].astype(jnp.float32)                         # (bb, W)
    seq_last = x[:, w_len - 1:w_len]                           # (bb, 1) last window value
    z = jnp.maximum(x - seq_last, 0.0)                         # subtract-last + ReLU (f32 VPU)

    # Shared Linear along the window axis: one (bb, W) @ (W, F_pad) MXU matmul (bf16 in,
    # f32 accumulate).
    y = jnp.dot(z.astype(wt_ref.dtype), wt_ref[...],
                preferred_element_type=jnp.float32)            # (bb, F_pad)
    y = y + b_ref[...] + seq_last                              # bias + add seq_last back
    yr = jnp.maximum(y, 0.0)                                   # ReLU before final layer

    @pl.when(c == 0)
    def _():                                                   # init resident accumulator
        o_ref[...] = jnp.zeros(o_ref.shape, o_ref.dtype)

    # Final Linear(C->1): per-channel scalar FMA into the resident output block
    # (replaces the old block-diagonal combine matmul).
    o_ref[...] = o_ref[...] + fcw_ref[c] * yr


def _choose_bb(B, W, F_pad, x_itemsize):
    """Pick the batch block bb from a conservative per-block VMEM budget.

    ~10 MiB fits under the default scoped VMEM on v5e (16 MiB), v6e (32 MiB) and
    v7x (32 MiB scoped / 64 MiB physical), so no vmem_limit_bytes override is needed.
    """
    budget = 10 * 1024 * 1024

    def est(bb):
        return (2 * bb * W * x_itemsize        # double-buffered x block
                + 2 * bb * F_pad * 4           # output accumulator block (2 buffers)
                + bb * F_pad * 4               # in-kernel f32 y / yr intermediate
                + bb * W * 4)                  # in-kernel f32 z intermediate

    bb = 1024                                  # target 512-1024 MXU rows per matmul
    while bb > 8 and est(bb) > budget:
        bb -= 8
    bb = min(bb, _round_up(B, 8))
    # Keep >= 2 batch blocks when the batch allows it (megacore split on v7x).
    if _round_up(B, 8) >= 16 and _round_up(B, bb) // bb < 2:
        bb = _round_up(-(-B // 2), 8)
    return bb


@functools.partial(jax.jit, static_argnames=("compute_dtype",))
def nlinear_forward(x, params, compute_dtype=jnp.bfloat16):
    """x: (B, W, C) float32 — (batch, window, features), PyTorch batch-first. Returns (B, F)."""
    B, W, C = x.shape
    F = params["lin_w"].shape[0]
    F_pad = _round_up(F, 128)                         # lane-dense output stores

    bb = _choose_bb(B, W, F_pad, jnp.dtype(compute_dtype).itemsize)
    B_pad = _round_up(B, bb)
    grid = (B_pad // bb, C)                           # channel reduction axis last

    # ---- layout plumbing (XLA glue) ----
    # Channel-major (C, B_pad, W): each grid step streams one contiguous (bb, W) slab.
    # TODO(synk): for short windows (W << 128) the x lane axis is under-filled; a
    #             (B, W, C)-blocked dot_general variant would avoid this and the transpose.
    xt = jnp.transpose(x, (2, 0, 1)).astype(compute_dtype)      # (C, B, W)
    if B_pad != B:
        xt = jnp.pad(xt, ((0, 0), (0, B_pad - B), (0, 0)))

    lin_wt = jnp.pad(params["lin_w"].T.astype(compute_dtype),
                     ((0, 0), (0, F_pad - F)))                   # (W, F_pad)
    lin_b = jnp.pad(params["lin_b"].astype(jnp.float32),
                    (0, F_pad - F)).reshape(1, F_pad)            # (1, F_pad)
    fc_w = params["fc_w"].reshape(C).astype(jnp.float32)         # (C,) SMEM scalars

    const = lambda b, c: (0, 0)
    grid_spec = pltpu.PrefetchScalarGridSpec(
        num_scalar_prefetch=0,
        grid=grid,
        in_specs=[
            pl.BlockSpec((None, bb, W), lambda b, c: (c, b, 0)),   # one channel slab per step
            pl.BlockSpec((W, F_pad), const),                       # Linear(W->F) weight (T)
            pl.BlockSpec((1, F_pad), const),                       # Linear bias
            pl.BlockSpec(memory_space=pltpu.MemorySpace.SMEM),     # final_layer.weight
        ],
        out_specs=pl.BlockSpec((bb, F_pad), lambda b, c: (b, 0)),  # resident accumulator
    )

    out = pl.pallas_call(
        nlinear_kernel,
        out_shape=jax.ShapeDtypeStruct((B_pad, F_pad), jnp.float32),
        grid_spec=grid_spec,
        compiler_params=pltpu.CompilerParams(
            dimension_semantics=("parallel", "arbitrary")),
    )(xt, lin_wt, lin_b, fc_w)

    # Final bias added wrapper-side (removes a (1,1) VMEM operand); drop padding.
    return out[:B, :F] + params["fc_b"]


def init_params(key, W, F, C):
    """Deterministic init mimicking PyTorch nn.Linear U(-1/sqrt(fan_in), 1/sqrt(fan_in))."""
    ks = jax.random.split(key, 4)

    def u(k, shape, fan_in):
        s = 1.0 / jnp.sqrt(fan_in)
        return jax.random.uniform(k, shape, jnp.float32, -s, s)

    return {
        "lin_w": u(ks[0], (F, W), W),   # nn.Linear(window_size, forecast_size).weight
        "lin_b": u(ks[1], (F,), W),
        "fc_w": u(ks[2], (1, C), C),    # final_layer = nn.Linear(feature_size, 1).weight
        "fc_b": u(ks[3], (1,), C),
    }


def reference_forward(x, p):
    """Pure-JAX reference replicating NLINEAR.forward (individual=False, norm=None, eval)."""
    seq_last = x[:, -1:, :]                                    # (B, 1, C)
    xc = x - seq_last
    z = jnp.maximum(jnp.transpose(xc, (0, 2, 1)), 0.0)         # (B, C, W)
    y = z @ p["lin_w"].T + p["lin_b"]                          # (B, C, F)
    y = jnp.transpose(y, (0, 2, 1)) + seq_last                 # (B, F, C)
    out = jnp.maximum(y, 0.0) @ p["fc_w"].T + p["fc_b"]        # (B, F, 1)
    return out[..., 0]                                         # (B, F)


if __name__ == "__main__":
    B, W, F, C = 2, 16, 8, 4       # batch, window_size, forecast_size, feature_size
    key = jax.random.PRNGKey(0)
    kx, kp = jax.random.split(key)
    x = jax.random.normal(kx, (B, W, C), dtype=jnp.float32)
    params = init_params(kp, W, F, C)

    ref = reference_forward(x, params)

    # f32 path: exact check of the kernel structure.
    out_f32 = jax.block_until_ready(nlinear_forward(x, params, compute_dtype=jnp.float32))
    assert out_f32.shape == (B, F), out_f32.shape
    assert jnp.allclose(out_f32, ref, atol=1e-5, rtol=1e-5), (out_f32, ref)

    # default bf16-input path (f32 accumulation): loose tolerance for bf16 representation error.
    out = jax.block_until_ready(nlinear_forward(x, params))
    assert out.shape == (B, F), out.shape
    assert jnp.allclose(out, ref, atol=5e-2, rtol=5e-2), (out, ref)

    print("KERNEL_OK")
</pallas_src>

<mosaic_0001>
module attributes {stable_mosaic.version = 11 : i64} {
  func.func @nlinear_kernel(%arg0: i32, %arg1: i32, %arg2: memref<1x8x16xf32, #tpu.memory_space<vmem>>, %arg3: memref<16x128xf32, #tpu.memory_space<vmem>>, %arg4: memref<1x128xf32, #tpu.memory_space<vmem>>, %arg5: memref<4xf32, #tpu.memory_space<smem>>, %arg6: memref<8x128xf32, #tpu.memory_space<vmem>>) attributes {dimension_semantics = [#tpu.dimension_semantics<parallel>, #tpu.dimension_semantics<arbitrary>], iteration_bounds = array<i64: 1, 4>, scalar_prefetch = 0 : i64, scratch_operands = 0 : i64, tpu.core_type = #tpu.core_type<tc>, window_params = [{transform_indices = @transform_0, window_bounds = array<i64: 1, 8, 16>}, {pipeline_mode = #tpu.pipeline_mode<synchronous>, transform_indices = @transform_1, window_bounds = array<i64: 16, 128>}, {pipeline_mode = #tpu.pipeline_mode<synchronous>, transform_indices = @transform_2, window_bounds = array<i64: 1, 128>}, {transform_indices = @transform_3, window_bounds = array<i64: 4>}, {transform_indices = @transform_4, window_bounds = array<i64: 8, 128>}]} {
    %c0 = arith.constant 0 : index
    %c0_0 = arith.constant 0 : index
    %c0_1 = arith.constant 0 : index
    %0 = vector.load %arg2[%c0, %c0_0, %c0_1] : memref<1x8x16xf32, #tpu.memory_space<vmem>>, vector<1x8x16xf32>
    %1 = vector.shape_cast %0 : vector<1x8x16xf32> to vector<8x16xf32>
    %2 = vector.extract_strided_slice %1 {offsets = [0, 15], sizes = [8, 1], strides = [1, 1]} : vector<8x16xf32> to vector<8x1xf32>
    %3 = vector.broadcast %2 : vector<8x1xf32> to vector<8x16xf32>
    %4 = arith.subf %1, %3 : vector<8x16xf32>
    %cst = arith.constant 0.000000e+00 : f32
    %5 = vector.broadcast %cst : f32 to vector<8x16xf32>
    %6 = arith.maximumf %4, %5 : vector<8x16xf32>
    %c0_2 = arith.constant 0 : index
    %c0_3 = arith.constant 0 : index
    %7 = vector.load %arg3[%c0_2, %c0_3] : memref<16x128xf32, #tpu.memory_space<vmem>>, vector<16x128xf32>
    %cst_4 = arith.constant dense<0.000000e+00> : vector<8x128xf32>
    %8 = tpu.matmul %6, %7, %cst_4 {dimension_numbers = #tpu.dot_dimension_numbers<[1], [0], [0], [1], [0, 0, 1, 1], [], []>} : vector<8x16xf32>, vector<16x128xf32>, vector<8x128xf32> -> vector<8x128xf32>
    %c0_5 = arith.constant 0 : index
    %c0_6 = arith.constant 0 : index
    %9 = vector.load %arg4[%c0_5, %c0_6] : memref<1x128xf32, #tpu.memory_space<vmem>>, vector<1x128xf32>
    %10 = vector.broadcast %9 : vector<1x128xf32> to vector<8x128xf32>
    %11 = arith.addf %8, %10 : vector<8x128xf32>
    %12 = vector.broadcast %2 : vector<8x1xf32> to vector<8x128xf32>
    %13 = arith.addf %11, %12 : vector<8x128xf32>
    %cst_7 = arith.constant 0.000000e+00 : f32
    %14 = vector.broadcast %cst_7 : f32 to vector<8x128xf32>
    %15 = arith.maximumf %13, %14 : vector<8x128xf32>
    %c0_i32 = arith.constant 0 : i32
    %16 = arith.cmpi eq, %arg1, %c0_i32 : i32
    %17 = arith.extui %16 : i1 to i32
    %c0_i32_8 = arith.constant 0 : i32
    %18 = arith.cmpi ne, %17, %c0_i32_8 : i32
    scf.if %18 {
      %cst_13 = arith.constant 0.000000e+00 : f32
      %26 = vector.broadcast %cst_13 : f32 to vector<8x128xf32>
      %c0_14 = arith.constant 0 : index
      %c0_15 = arith.constant 0 : index
      %27 = vector.load %arg6[%c0_14, %c0_15] : memref<8x128xf32, #tpu.memory_space<vmem>>, vector<8x128xf32>
      tpu.vector_store %arg6[%c0_14, %c0_15], %26 {strides = array<i32>} : memref<8x128xf32, #tpu.memory_space<vmem>>, vector<8x128xf32>,
    } else {
    }
    %c0_9 = arith.constant 0 : index
    %c0_10 = arith.constant 0 : index
    %19 = vector.load %arg6[%c0_9, %c0_10] : memref<8x128xf32, #tpu.memory_space<vmem>>, vector<8x128xf32>
    %20 = arith.index_cast %arg1 : i32 to index
    %21 = memref.load %arg5[%20] : memref<4xf32, #tpu.memory_space<smem>>
    %22 = vector.broadcast %21 : f32 to vector<8x128xf32>
    %23 = arith.mulf %22, %15 : vector<8x128xf32>
    %24 = arith.addf %19, %23 : vector<8x128xf32>
    %c0_11 = arith.constant 0 : index
    %c0_12 = arith.constant 0 : index
    %25 = vector.load %arg6[%c0_11, %c0_12] : memref<8x128xf32, #tpu.memory_space<vmem>>, vector<8x128xf32>
    tpu.vector_store %arg6[%c0_11, %c0_12], %24 {strides = array<i32>} : memref<8x128xf32, #tpu.memory_space<vmem>>, vector<8x128xf32>,
    return
  }
  func.func @transform_0(%arg0: i32, %arg1: i32) -> (i32, i32, i32) {
    %c0_i32 = arith.constant 0 : i32
    %c0_i32_0 = arith.constant 0 : i32
    return %arg1, %arg0, %c0_i32 : i32, i32, i32
  }
  func.func @transform_1(%arg0: i32, %arg1: i32) -> (i32, i32) {
    %c0_i32 = arith.constant 0 : i32
    %c0_i32_0 = arith.constant 0 : i32
    %c0_i32_1 = arith.constant 0 : i32
    return %c0_i32, %c0_i32_0 : i32, i32
  }
  func.func @transform_2(%arg0: i32, %arg1: i32) -> (i32, i32) {
    %c0_i32 = arith.constant 0 : i32
    %c0_i32_0 = arith.constant 0 : i32
    %c0_i32_1 = arith.constant 0 : i32
    return %c0_i32, %c0_i32_0 : i32, i32
  }
  func.func @transform_3(%arg0: i32, %arg1: i32) -> i32 {
    %c0_i32 = arith.constant 0 : i32
    %c0_i32_0 = arith.constant 0 : i32
    return %c0_i32 : i32
  }
  func.func @transform_4(%arg0: i32, %arg1: i32) -> (i32, i32) {
    %c0_i32 = arith.constant 0 : i32
    %c0_i32_0 = arith.constant 0 : i32
    return %arg0, %c0_i32 : i32, i32
  }
}

</mosaic_0001>

<bundles_post_ra>
// kernel: nlinear_forward.1
= control target key start
LH: loop header
LB: loop body
LE: loop exit
PB: predicated region body
PF: predicated region fallthrough
CT: control target
= control target key end

     0   :  { %9 = vsyncpa [#allocation3], 0  ;;  %s549_s15 = smov 0   ;;  %s551_s16 = smov 0   ;;  %s625_s0 = inlined_call_operand.vmem [shape: f32[4,8,16], index: 0, kind: input, shape index: {}]   ;;  %s626_s1 = inlined_call_operand.vmem [shape: f32[16,128], index: 1, kind: input, shape index: {}]   ;;  %s627_s2 = inlined_call_operand.vmem [shape: f32[1,128], index: 2, kind: input, shape index: {}]   ;;  %s628_s3 = inlined_call_operand.vmem [shape: f32[4], index: 3, kind: input, shape index: {}]   ;;  %s629_s4 = inlined_call_operand.vmem [shape: f32[8,128], index: 4, kind: output, shape index: {}]  }
   0x1   :  { %s553_s17 = smov 0  }
   0x2 LB: > { %s408_s18 = sadd.s32 4294967295, %s516_s17   ;;  %s24_s19 = sadd.s32 1, %s512_s16  ;;  %s516_s17 = sphi %s553_s17, %s15_s17   ;;  %s512_s16 = sphi %s551_s16, %s633_s16   ;;  %s508_s15 = sphi %s549_s15, %s632_s15  }
   0x3   : > { %p25_p0 = scmp.ge.s32.totalorder %s24_s19, 4  ;;  %p409_p1 = scmp.ge.s32.totalorder %s516_s17, 1 }
   0x4   : > { %p149_p2 = scmp.lt.s32.totalorder %s516_s17, 5  ;;  %p574_p4 = scmp.eq.s32.totalorder %s408_s18, 0 }
   0x5   : > { %s635_s19 = smov (%p25_p0, %s24_s19), 0  ;;  %s168_s24 = sshll.u32 %s628_s3, 4  ;;  %s169_s24 = int_to_ptr.vmem [resolvable:$true] %s168_s24 }
   0x6   : > { %p570_p3 = pnand %p409_p1, %p149_p2  ;;  %s475_s25 = scalar_lea.vmem %s169_s24, 16 }
   0x7   : > { %p476_p7 = scmp.ne.s32.totalorder %s169_s24, %s475_s25  ;;  %p483_p11 = scmp.lt.s32.totalorder %s169_s24, %s169_s24 }
   0x8   : > { %p438_p5 = pneg %p570_p3  ;;  %p484_p12 = scmp.lt.s32.totalorder %s475_s25, %s475_s25 }
   0xa   : > { %p439_p6 = pnand %p574_p4, %p438_p5  ;;  %p485_p13 = por %p484_p12, %p483_p11 }
   0xc   : > { %p477_p8 = pneg %p439_p6 }
   0xe   : > { %p478_p9 = pnand %p477_p8, %p476_p7 }
  0x10   : > { %p479_p10 = pneg %p478_p9 }
  0x12   : > { %p486_p0 = pnand %p485_p13, %p479_p10 }
  0x14   : > { %489 = shalt.err (!%p486_p0)
}
  0x15   : > { %s518_s26 = smov [#allocation2]   ;;  %191 = sbr.rel (%p570_p3) target bundleno = 399 (0x18f), region = 36 }
  0x16   : > { %441 = dma.vmem_to_smem (!%p439_p6), %s169_s24, 16, %s518_s26, [#allocation3]  }
  0x1c   : > { %503 = dma.done.wait (%p574_p4), [#allocation3], 16  }
  0x1d   : > { %505 = vsyncadd (%p574_p4), [#allocation3], 4294967280 }
  0x1e   : > { %197 = sfence }
  0x1f   : > { %p219_p1 = scmp.lt.s32.totalorder %s508_s15, 3  ;;  %v519_v0 = vmov 15   ;;  %v238_v1 = vld [vmem:[%s626_s1] sm:$0xff]  ;;  %v239_v2 = vld [vmem:[%s626_s1 + $0x8] sm:$0xff]  ;;  %v520_v5 = vmov 0.0|0.0   ;;  %vm521_vm0 = vmmov 0  }
  0x20   : > { %474 = vset.pattern.permute.xlu0 %v519_v0  ;;  %v432_v4 = vpack.c.bf16 %v239_v2, %v238_v1  ;;  %431 = vmatprep.subr.bf16.mxu0 %v520_v5  ;;  %v522_v6 = vmov 0.0   ;;  %vm247_vm1 = vcmask 130048   ;;  %v415_v10 = vld [vmem:[%s627_s2] ss:$0 sm:$0xff]  ;;  %p417_p2 = scmp.ne.s32.totalorder %s508_s15, 0 }
  0x21   : > { %s220_s27 = scalar_select %p219_p1, %s508_s15, 3  ;;  %428 = vmatprep.mubr.msk.f32.mxu0 %vm521_vm0, %v522_v6 }
  0x22   : > { %433 = vmatpush3.bf16.msra.mxu0 %v432_v4  ;;  %v523_v16 = vmov (!%p417_p2), 0.0  }
  0x23   : > { %s414_s28 = sshll.u32 %s220_s27, 3  ;;  %327 = vst [vmem:[%s629_s4] sm:$0xff] (!%p417_p2), %v523_v16 }
  0x24   : > { %s225_s5 = scalar_lea.vmem %s625_s0, %s414_s28 }
  0x25   : > { %v230_v3 = vld [vmem:[%s225_s5] sm:$0xff] }
  0x26   : > { %233 = vperm.xlu0 %474, %v230_v3  }
  0xa5   : > { %v234_v7 = vpop.permute.xlu0 %233 }
  0xa6   : > { %v236_v8 = vsub.f32 %v230_v3, %v234_v7 }
  0xa8   : > { %v237_v9 = vmax.f32 %v236_v8, 0.0 }
  0xaa   : > { %429 = vmatmul.mubr.msk.f32.vlgmr.msra.gmra.mrb[0].mxu0 %vm247_vm1, %v237_v9 }
 0x17c   : > { %326 = sbr.rel (%p417_p2) target bundleno = 387 (0x183), region = 44 }
 0x17d   : > { %v317_v11 = vpop.f32.mrb[0].mxu0 }
 0x17e   : > { %v318_v12 = vadd.f32 %v415_v10, %v317_v11  ;;  %v430_v13 = vpop.f32.mrb[1].mxu0 }
 0x180   : > { %v321_v14 = vadd.f32 %v318_v12, %v234_v7 }
 0x182   : > { %v322_v15 = vmax.f32 %v321_v14, 0.0 }
 0x183 PF: > { %s329_s14 = sld [smem:[#allocation2 + %s508_s15]]  ;;  %v328_v17 = vld [vmem:[%s629_s4] sm:$0xff] }
 0x189   : > { %v330_v18 = vstv %s329_s14 }
 0x18a   : > { %v331_v19 = vmul.f32 %v330_v18, %v322_v15 }
 0x18c   : > { %v332_v20 = vadd.f32 %v331_v19, %v328_v17 }
 0x18e   : > { %333 = vst [vmem:[%s629_s4] sm:$0xff] %v332_v20 }
 0x18f PF: > { %s15_s17 = sadd.s32 1, %s516_s17   ;;  %s632_s15 = smov %s512_s16 }
 0x190   : > { %p12_p3 = scmp.ge.s32.totalorder %s15_s17, 6   ;;  %s633_s16 = smov %s635_s19 }
 0x192   :  { %14 = sbr.rel (!%p12_p3) target bundleno = 2 (0x2), region = 75 }
 0x199   :  { %353 = vsyncpa [#allocation3], 1 }
 0x19a   :  { %355 = vsyncpa [#allocation3 + $0x1], 1 }

</bundles_post_ra>
